<compile_context>
chip_gen: v5e
topology: v5e:2x2
jax: 0.10.0
libtpu: 0.0.40
codegen_flags: <defaults>
</compile_context>

<pallas_src>
import functools
import math

import jax
import jax.numpy as jnp
import numpy as np
from jax.experimental import pallas as pl
from jax.experimental.pallas import tpu as pltpu


def _round_up(n, m):
    return ((n + m - 1) // m) * m


def _pick_row_tile(rows, H, use_dropout):
    """Largest row tile (multiple of 8, <=256) that fits a ~40 MiB VMEM budget."""
    budget = 40 * 1024 * 1024
    w_bytes = 2 * H * H * 2                       # bf16 W, double-buffered by the pipeline
    avail = max(budget - w_bytes, 4 * 1024 * 1024)
    tiles_per_row = 3 if use_dropout else 2       # x + out (+ dropout bits), all 4 B/elem
    tm = avail // (2 * tiles_per_row * H * 4)     # double-buffered
    tm = max(8, min(256, tm))
    tm = (tm // 8) * 8
    tm = min(tm, _round_up(rows, 8))              # don't tile past the (padded) row count
    return int(tm)


def _sublayer_connection_kernel(x_ref, gamma_ref, beta_ref, w_ref, b_ref, *rest,
                                eps: float, keep_scale: float,
                                drop_threshold: int, use_dropout: bool):
    if use_dropout:
        bits_ref, o_ref = rest
    else:
        (o_ref,) = rest

    x = x_ref[...].astype(jnp.float32)                        # (TM, H)
    h = x.shape[-1]

    # ---- LayerNorm (PyTorch semantics: torch.std is unbiased, /(H-1)) ----
    mean = jnp.mean(x, axis=-1, keepdims=True)
    xc = x - mean
    var_unbiased = jnp.sum(xc * xc, axis=-1, keepdims=True) * (1.0 / (h - 1))
    inv = jax.lax.rsqrt(var_unbiased + eps)
    normed = gamma_ref[...] * (xc * inv) + beta_ref[...]      # (TM, H), f32

    # ---- sublayer: Linear(H, H) on the MXU, bf16 operands, f32 accumulation ----
    y = jnp.dot(normed.astype(jnp.bfloat16), w_ref[...],
                preferred_element_type=jnp.float32)
    y = y + b_ref[...]

    # ---- dropout (inverted, integer-threshold on precomputed uint32 bits) ----
    if use_dropout:
        keep = bits_ref[...] >= jnp.uint32(drop_threshold)    # P(keep) = 1 - p
        y = jnp.where(keep, y * jnp.float32(keep_scale), jnp.float32(0.0))

    # ---- residual ----
    o_ref[...] = (x + y).astype(o_ref.dtype)


def sublayer_connection(x, gamma, beta, w, b, *, eps=1e-6, dropout_p=0.1,
                        training=False, rng_key=None, row_tile=None):
    """x: (B, S, H) -> (B, S, H)."""
    B, S, H = x.shape
    rows = B * S
    use_dropout = bool(training) and float(dropout_p) > 0.0

    if row_tile is None:
        row_tile = _pick_row_tile(rows, H, use_dropout)
    padded_rows = _round_up(rows, row_tile)

    x2 = x.reshape(rows, H)
    if padded_rows != rows:
        x2 = jnp.pad(x2, ((0, padded_rows - rows), (0, 0)))   # masked tail via padding

    gamma2 = gamma.reshape(1, H).astype(jnp.float32)
    beta2 = beta.reshape(1, H).astype(jnp.float32)
    b2 = b.reshape(1, H).astype(jnp.float32)
    w_bf = w.astype(jnp.bfloat16)                             # halves W DMA bytes / VMEM

    drop_threshold = min(int(round(float(dropout_p) * (2 ** 32))), 2 ** 32 - 1)
    keep_scale = 1.0 / (1.0 - float(dropout_p)) if use_dropout else 1.0

    kernel = functools.partial(_sublayer_connection_kernel,
                               eps=float(eps), keep_scale=keep_scale,
                               drop_threshold=drop_threshold,
                               use_dropout=use_dropout)

    inputs = [x2, gamma2, beta2, w_bf, b2]
    in_specs = [
        pl.BlockSpec((row_tile, H), lambda i: (i, 0)),        # x tile
        pl.BlockSpec((1, H), lambda i: (0, 0)),               # gamma
        pl.BlockSpec((1, H), lambda i: (0, 0)),               # beta
        pl.BlockSpec((H, H), lambda i: (0, 0)),               # W (bf16)
        pl.BlockSpec((1, H), lambda i: (0, 0)),               # bias
    ]
    if use_dropout:
        if rng_key is None:
            rng_key = jax.random.PRNGKey(0)
        bits = jax.random.bits(rng_key, (padded_rows, H), dtype=jnp.uint32)
        inputs.append(bits)
        in_specs.append(pl.BlockSpec((row_tile, H), lambda i: (i, 0)))

    # VMEM estimate: double-buffered row tiles (f32/uint32) + bf16 W + params.
    tiles_per_row = 3 if use_dropout else 2
    vmem_est = (2 * tiles_per_row * row_tile * H * 4) + 2 * (H * H * 2) + 4 * 2 * H * 4
    vmem_limit = int(min(max(2 * vmem_est, 32 * 1024 * 1024), 48 * 1024 * 1024))

    out = pl.pallas_call(
        kernel,
        out_shape=jax.ShapeDtypeStruct((padded_rows, H), x.dtype),
        grid=(padded_rows // row_tile,),
        in_specs=in_specs,
        out_specs=pl.BlockSpec((row_tile, H), lambda i: (i, 0)),
        compiler_params=pltpu.CompilerParams(
            dimension_semantics=("parallel",),
            vmem_limit_bytes=vmem_limit),
    )(*inputs)

    if padded_rows != rows:
        out = out[:rows]
    return out.reshape(B, S, H)


def _reference(x, gamma, beta, w, b, eps=1e-6):
    """Pure-JAX reference (eval mode), matching the kernel's bf16-matmul numerics."""
    xf = x.astype(jnp.float32)
    mean = jnp.mean(xf, axis=-1, keepdims=True)
    xc = xf - mean
    var_unb = jnp.sum(xc * xc, axis=-1, keepdims=True) / (x.shape[-1] - 1)
    normed = gamma * (xc * jax.lax.rsqrt(var_unb + eps)) + beta
    y = jnp.einsum("bsh,hk->bsk", normed.astype(jnp.bfloat16), w.astype(jnp.bfloat16),
                   preferred_element_type=jnp.float32) + b
    return (xf + y).astype(x.dtype)


if __name__ == "__main__":
    B, S, H = 2, 8, 128
    key = jax.random.PRNGKey(0)
    kx, kw, kdrop = jax.random.split(key, 3)

    x = jax.random.normal(kx, (B, S, H), dtype=jnp.float32)

    # Deterministic parameter init (LayerNorm: ones/zeros; Linear: scaled normal / zeros).
    gamma = jnp.ones((H,), dtype=jnp.float32)
    beta = jnp.zeros((H,), dtype=jnp.float32)
    w = jax.random.normal(kw, (H, H), dtype=jnp.float32) * (1.0 / math.sqrt(H))
    b = jnp.zeros((H,), dtype=jnp.float32)

    # Eval mode (deterministic): compare against the reference.
    out = sublayer_connection(x, gamma, beta, w, b,
                              dropout_p=0.1, training=False)
    out = jax.block_until_ready(out)
    ref = _reference(x, gamma, beta, w, b)
    np.testing.assert_allclose(np.asarray(out), np.asarray(ref),
                               rtol=1e-3, atol=1e-3)

    # Training mode: exercise the integer-threshold dropout path.
    out_tr = sublayer_connection(x, gamma, beta, w, b,
                                 dropout_p=0.1, training=True, rng_key=kdrop)
    out_tr = jax.block_until_ready(out_tr)
    assert bool(jnp.all(jnp.isfinite(out_tr)))

    print("KERNEL_OK")
</pallas_src>

<mosaic_0001>
module attributes {stable_mosaic.version = 11 : i64} {
  func.func @_sublayer_connection_kernel(%arg0: i32, %arg1: memref<16x128xf32, #tpu.memory_space<vmem>>, %arg2: memref<1x128xf32, #tpu.memory_space<vmem>>, %arg3: memref<1x128xf32, #tpu.memory_space<vmem>>, %arg4: memref<128x128xbf16, #tpu.memory_space<vmem>>, %arg5: memref<1x128xf32, #tpu.memory_space<vmem>>, %arg6: memref<16x128xf32, #tpu.memory_space<vmem>>) attributes {dimension_semantics = [#tpu.dimension_semantics<parallel>], iteration_bounds = array<i64: 1>, scalar_prefetch = 0 : i64, scratch_operands = 0 : i64, tpu.core_type = #tpu.core_type<tc>, window_params = [{transform_indices = @transform_0, window_bounds = array<i64: 16, 128>}, {pipeline_mode = #tpu.pipeline_mode<synchronous>, transform_indices = @transform_1, window_bounds = array<i64: 1, 128>}, {pipeline_mode = #tpu.pipeline_mode<synchronous>, transform_indices = @transform_2, window_bounds = array<i64: 1, 128>}, {pipeline_mode = #tpu.pipeline_mode<synchronous>, transform_indices = @transform_3, window_bounds = array<i64: 128, 128>}, {pipeline_mode = #tpu.pipeline_mode<synchronous>, transform_indices = @transform_4, window_bounds = array<i64: 1, 128>}, {transform_indices = @transform_5, window_bounds = array<i64: 16, 128>}]} {
    %c0 = arith.constant 0 : index
    %c0_0 = arith.constant 0 : index
    %0 = vector.load %arg1[%c0, %c0_0] : memref<16x128xf32, #tpu.memory_space<vmem>>, vector<16x128xf32>
    %cst = arith.constant dense<0.000000e+00> : vector<16xf32>
    %1 = vector.multi_reduction <add>, %0, %cst [1] : vector<16x128xf32> to vector<16xf32>
    %2 = vector.shape_cast %1 : vector<16xf32> to vector<16x1xf32>
    %cst_1 = arith.constant 1.280000e+02 : f32
    %3 = vector.broadcast %cst_1 : f32 to vector<16x1xf32>
    %4 = arith.divf %2, %3 : vector<16x1xf32>
    %5 = vector.broadcast %4 : vector<16x1xf32> to vector<16x128xf32>
    %6 = arith.subf %0, %5 : vector<16x128xf32>
    %7 = arith.mulf %6, %6 : vector<16x128xf32>
    %cst_2 = arith.constant dense<0.000000e+00> : vector<16xf32>
    %8 = vector.multi_reduction <add>, %7, %cst_2 [1] : vector<16x128xf32> to vector<16xf32>
    %9 = vector.shape_cast %8 : vector<16xf32> to vector<16x1xf32>
    %cst_3 = arith.constant 0.00787401571 : f32
    %10 = vector.broadcast %cst_3 : f32 to vector<16x1xf32>
    %11 = arith.mulf %9, %10 : vector<16x1xf32>
    %cst_4 = arith.constant 9.99999997E-7 : f32
    %12 = vector.broadcast %cst_4 : f32 to vector<16x1xf32>
    %13 = arith.addf %11, %12 : vector<16x1xf32>
    %14 = math.rsqrt %13 : vector<16x1xf32>
    %c0_5 = arith.constant 0 : index
    %c0_6 = arith.constant 0 : index
    %15 = vector.load %arg2[%c0_5, %c0_6] : memref<1x128xf32, #tpu.memory_space<vmem>>, vector<1x128xf32>
    %16 = vector.broadcast %14 : vector<16x1xf32> to vector<16x128xf32>
    %17 = arith.mulf %6, %16 : vector<16x128xf32>
    %18 = vector.broadcast %15 : vector<1x128xf32> to vector<16x128xf32>
    %19 = arith.mulf %18, %17 : vector<16x128xf32>
    %c0_7 = arith.constant 0 : index
    %c0_8 = arith.constant 0 : index
    %20 = vector.load %arg3[%c0_7, %c0_8] : memref<1x128xf32, #tpu.memory_space<vmem>>, vector<1x128xf32>
    %21 = vector.broadcast %20 : vector<1x128xf32> to vector<16x128xf32>
    %22 = arith.addf %19, %21 : vector<16x128xf32>
    %23 = arith.truncf %22 : vector<16x128xf32> to vector<16x128xbf16>
    %c0_9 = arith.constant 0 : index
    %c0_10 = arith.constant 0 : index
    %24 = vector.load %arg4[%c0_9, %c0_10] : memref<128x128xbf16, #tpu.memory_space<vmem>>, vector<128x128xbf16>
    %cst_11 = arith.constant dense<0.000000e+00> : vector<16x128xf32>
    %25 = tpu.matmul %23, %24, %cst_11 {dimension_numbers = #tpu.dot_dimension_numbers<[1], [0], [0], [1], [0, 0, 1, 1], [], []>} : vector<16x128xbf16>, vector<128x128xbf16>, vector<16x128xf32> -> vector<16x128xf32>
    %c0_12 = arith.constant 0 : index
    %c0_13 = arith.constant 0 : index
    %26 = vector.load %arg5[%c0_12, %c0_13] : memref<1x128xf32, #tpu.memory_space<vmem>>, vector<1x128xf32>
    %27 = vector.broadcast %26 : vector<1x128xf32> to vector<16x128xf32>
    %28 = arith.addf %25, %27 : vector<16x128xf32>
    %29 = arith.addf %0, %28 : vector<16x128xf32>
    %c0_14 = arith.constant 0 : index
    %c0_15 = arith.constant 0 : index
    %30 = vector.load %arg6[%c0_14, %c0_15] : memref<16x128xf32, #tpu.memory_space<vmem>>, vector<16x128xf32>
    tpu.vector_store %arg6[%c0_14, %c0_15], %29 {strides = array<i32>} : memref<16x128xf32, #tpu.memory_space<vmem>>, vector<16x128xf32>,
    return
  }
  func.func @transform_0(%arg0: i32) -> (i32, i32) {
    %c0_i32 = arith.constant 0 : i32
    %c0_i32_0 = arith.constant 0 : i32
    return %arg0, %c0_i32 : i32, i32
  }
  func.func @transform_1(%arg0: i32) -> (i32, i32) {
    %c0_i32 = arith.constant 0 : i32
    %c0_i32_0 = arith.constant 0 : i32
    %c0_i32_1 = arith.constant 0 : i32
    return %c0_i32, %c0_i32_0 : i32, i32
  }
  func.func @transform_2(%arg0: i32) -> (i32, i32) {
    %c0_i32 = arith.constant 0 : i32
    %c0_i32_0 = arith.constant 0 : i32
    %c0_i32_1 = arith.constant 0 : i32
    return %c0_i32, %c0_i32_0 : i32, i32
  }
  func.func @transform_3(%arg0: i32) -> (i32, i32) {
    %c0_i32 = arith.constant 0 : i32
    %c0_i32_0 = arith.constant 0 : i32
    %c0_i32_1 = arith.constant 0 : i32
    return %c0_i32, %c0_i32_0 : i32, i32
  }
  func.func @transform_4(%arg0: i32) -> (i32, i32) {
    %c0_i32 = arith.constant 0 : i32
    %c0_i32_0 = arith.constant 0 : i32
    %c0_i32_1 = arith.constant 0 : i32
    return %c0_i32, %c0_i32_0 : i32, i32
  }
  func.func @transform_5(%arg0: i32) -> (i32, i32) {
    %c0_i32 = arith.constant 0 : i32
    %c0_i32_0 = arith.constant 0 : i32
    return %arg0, %c0_i32 : i32, i32
  }
}

</mosaic_0001>

<bundles_post_ra>
// kernel: tpu_custom_call.1
= control target key start
LH: loop header
LB: loop body
LE: loop exit
PB: predicated region body
PF: predicated region fallthrough
CT: control target
= control target key end

     0   :  { %10 = vsyncpa [#allocation3], 0  ;;  %s467_s0 = inlined_call_operand.hbm [shape: f32[16,128], index: 0, kind: input, shape index: {}]   ;;  %s468_s1 = inlined_call_operand.hbm [shape: f32[1,128], index: 1, kind: input, shape index: {}]   ;;  %s469_s2 = inlined_call_operand.vmem [shape: f32[1,128], index: 2, kind: input, shape index: {}]   ;;  %s470_s3 = inlined_call_operand.hbm [shape: bf16[128,128], index: 3, kind: input, shape index: {}]   ;;  %s471_s4 = inlined_call_operand.vmem [shape: f32[1,128], index: 4, kind: input, shape index: {}]   ;;  %s472_s5 = inlined_call_operand.hbm [shape: f32[16,128], index: 5, kind: output, shape index: {}]  }
   0x1   :  { %11 = vsyncpa [#allocation6], 0  ;;  %s31_s20 = sshll.u32 %s468_s1, 4  ;;  %s32_s20 = int_to_ptr.hbm [resolvable:$true] %s31_s20 }
   0x2   :  { %12 = vsyncpa [#allocation4], 0  ;;  %s394_s21 = smov [#allocation5]   ;;  %s17_s25 = sshll.u32 %s467_s0, 4  ;;  %s18_s25 = int_to_ptr.hbm [resolvable:$true] %s17_s25 }
   0x3   :  { %s33_s22 = sshll.u32 %s394_s21, 4  ;;  %s395_s26 = smov [#allocation2]   ;;  %s34_s22 = int_to_ptr.vmem [resolvable:$true] %s33_s22 }
   0x4   :  { %36 = dma.hbm_to_vmem [thread:$0]  %s32_s20, 16, %s34_s22, [#allocation6]  }
   0x5   :  { %s19_s27 = sshll.u32 %s395_s26, 4  ;;  %s396_s28 = smov 128   ;;  %s20_s27 = int_to_ptr.vmem [resolvable:$true] %s19_s27 }
   0x6   :  { %s397_s29 = smov 8   ;;  %s43_s6 = sshll.u32 %s470_s3, 4  ;;  %s44_s6 = int_to_ptr.hbm [resolvable:$true] %s43_s6 }
   0x7   :  { %25 = dma.hbm_to_vmem [thread:$0]  %s18_s25, 256, %s20_s27, [#allocation3], %s396_s28, %s396_s28, %s397_s29  }
   0x8   :  { %s398_s7 = smov [#allocation7]   ;;  %s399_s0 = smov 64  }
   0x9   :  { %s45_s8 = sshll.u32 %s398_s7, 4  ;;  %s400_s9 = smov 4   ;;  %s46_s8 = int_to_ptr.vmem [resolvable:$true] %s45_s8 }
   0xa   :  { %51 = dma.hbm_to_vmem [thread:$0]  %s44_s6, 1024, %s46_s8, [#allocation6], %s399_s0, %s399_s0, %s400_s9  }
   0xb   :  { %388 = dma.done.wait [#allocation3], 256  }
   0xc   :  { %389 = vsyncadd [#allocation3], 4294967040 }
   0xd   :  { %390 = dma.done.wait [#allocation6], 1040  }
   0xe   :  { %391 = vsyncadd [#allocation6], 4294966256  ;;  %v445_v0 = vld [vmem:[#allocation2] sm:$0xff]  ;;  %v448_v1 = vld [vmem:[#allocation2 + $0x8] sm:$0xff]  ;;  %v401_v2 = vmov 128.0   ;;  %s402_s13 = smov [#allocation8]  }
   0xf   :  { %68 = vadd.xlane.f32.xlu0 %v445_v0  ;;  %286 = vrcp.f32 %v401_v2  ;;  %v273_v17 = vld [vmem:[#allocation7 + $0x38] sm:$0xff]  ;;  %v272_v18 = vld [vmem:[#allocation7 + $0x30] sm:$0xff]  ;;  %v271_v19 = vld [vmem:[#allocation7 + $0x28] sm:$0xff]  ;;  %s218_s14 = sshll.u32 %s402_s13, 4  ;;  %s219_s14 = int_to_ptr.vmem [resolvable:$true] %s218_s14 }
  0x10   :  { %196 = vmatpush.bf16.msra.mxu0 %v273_v17  ;;  %v270_v20 = vld [vmem:[#allocation7 + $0x20] sm:$0xff]  ;;  %v269_v21 = vld [vmem:[#allocation7 + $0x18] sm:$0xff]  ;;  %v268_v22 = vld [vmem:[#allocation7 + $0x10] sm:$0xff] }
  0x11   :  { %v267_v23 = vld [vmem:[#allocation7 + $0x8] sm:$0xff]  ;;  %v266_v25 = vld [vmem:[#allocation7] sm:$0xff]  ;;  %v283_v44 = vld [vmem:[#allocation5] ss:$0 sm:$0xff] }
  0x12   :  { %v284_v49 = vld [vmem:[%s469_s2] ss:$0 sm:$0xff]  ;;  %s220_s2 = sshll.u32 %s472_s5, 4  ;;  %s221_s2 = int_to_ptr.hbm [resolvable:$true] %s220_s2 }
  0x13   :  { %v285_v54 = vld [vmem:[%s471_s4] ss:$0 sm:$0xff] }
  0x14   :  { %197 = vmatpush.bf16.msra.mxu0 %v272_v18 }
  0x15   :  { %v287_v3 = vpop.eup %286 }
  0x16   :  { %v73_v4 = vmul.f32 128.0, %v287_v3  ;;  %vm77_vm0 = vweird.f32 %v287_v3 }
  0x17   :  { %70 = vadd.xlane.f32.xlu0 %v448_v1 }
  0x18   :  { %v74_v5 = vsub.f32 1.0, %v73_v4  ;;  %198 = vmatpush.bf16.msra.mxu0 %v271_v19 }
  0x1a   :  { %v75_v6 = vmul.f32 %v287_v3, %v74_v5 }
  0x1c   :  { %v76_v7 = vadd.f32 %v287_v3, %v75_v6  ;;  %199 = vmatpush.bf16.msra.mxu0 %v270_v20 }
  0x1e   :  { %v78_v8 = vsel %vm77_vm0, %v287_v3, %v76_v7 }
  0x20   :  { %200 = vmatpush.bf16.msra.mxu0 %v269_v21 }
  0x24   :  { %201 = vmatpush.bf16.msra.mxu0 %v268_v22 }
  0x28   :  { %202 = vmatpush.bf16.msra.mxu0 %v267_v23 }
  0x2c   :  { %203 = vmatpush.bf16.msra.mxu0 %v266_v25 }
  0x82   :  { %v69_v9 = vpop.xlane.xlu0 %68 }
  0x83   :  { %v79_v10 = vmul.f32 %v78_v8, %v69_v9 }
  0x85   :  { %v81_v11 = vsub.f32 %v445_v0, %v79_v10 }
  0x87   :  { %v83_v12 = vmul.f32 %v81_v11, %v81_v11 }
  0x89   :  { %85 = vadd.xlane.f32.xlu1 %v83_v12 }
  0x8a   :  { %v71_v13 = vpop.xlane.xlu0 %70 }
  0x8b   :  { %v80_v14 = vmul.f32 %v78_v8, %v71_v13 }
  0x8d   :  { %v82_v15 = vsub.f32 %v448_v1, %v80_v14 }
  0x8f   :  { %v84_v16 = vmul.f32 %v82_v15, %v82_v15 }
  0x91   :  { %87 = vadd.xlane.f32.xlu1 %v84_v16 }
  0xfc   :  { %v86_v24 = vpop.xlane.xlu1 %85 }
  0xfd   :  { %v89_v26 = vmul.f32 0.007874016, %v86_v24 }
  0xff   :  { %v91_v27 = vadd.f32 1e-06, %v89_v26 }
 0x101   :  { %288 = vrsqrt.f32 %v91_v27  ;;  %vm99_vm2 = vweird.f32 %v91_v27 }
 0x104   :  { %v88_v28 = vpop.xlane.xlu1 %87 }
 0x105   :  { %v90_v29 = vmul.f32 0.007874016, %v88_v28 }
 0x107   :  { %v289_v30 = vpop.eup %288  ;;  %v92_v31 = vadd.f32 1e-06, %v90_v29 }
 0x108   :  { %v94_v32 = vmul.f32 %v289_v30, %v91_v27  ;;  %vm100_vm1 = vweird.f32 %v289_v30 }
 0x109   :  { %290 = vrsqrt.f32 %v92_v31  ;;  %vm101_vm3 = vmor %vm99_vm2, %vm100_vm1  ;;  %vm109_vm5 = vweird.f32 %v92_v31 }
 0x10a   :  { %v95_v33 = vmul.f32 %v289_v30, %v94_v32 }
 0x10c   :  { %v96_v34 = vmul.f32 0.5, %v95_v33 }
 0x10e   :  { %v97_v35 = vsub.f32 1.5, %v96_v34 }
 0x10f   :  { %v291_v36 = vpop.eup %290 }
 0x110   :  { %v98_v37 = vmul.f32 %v289_v30, %v97_v35  ;;  %v104_v38 = vmul.f32 %v291_v36, %v92_v31  ;;  %vm110_vm4 = vweird.f32 %v291_v36 }
 0x111   :  { %vm111_vm6 = vmor %vm109_vm5, %vm110_vm4 }
 0x112   :  { %v105_v39 = vmul.f32 %v291_v36, %v104_v38  ;;  %v102_v41 = vsel %vm101_vm3, %v289_v30, %v98_v37 }
 0x113   :  { %v114_v43 = vmul.f32 %v102_v41, %v81_v11 }
 0x114   :  { %v106_v40 = vmul.f32 0.5, %v105_v39 }
 0x115   :  { %v119_v48 = vmul.f32 %v283_v44, %v114_v43 }
 0x116   :  { %v107_v42 = vsub.f32 1.5, %v106_v40 }
 0x117   :  { %v125_v51 = vadd.f32 %v284_v49, %v119_v48 }
 0x118   :  { %v108_v45 = vmul.f32 %v291_v36, %v107_v42 }
 0x11a   :  { %v112_v46 = vsel %vm111_vm6, %v291_v36, %v108_v45 }
 0x11b   :  { %v115_v47 = vmul.f32 %v112_v46, %v82_v15 }
 0x11d   :  { %v120_v50 = vmul.f32 %v283_v44, %v115_v47 }
 0x11f   :  { %v126_v52 = vadd.f32 %v284_v49, %v120_v50 }
 0x121   :  { %v127_v53 = vpack.c.bf16 %v126_v52, %v125_v51 }
 0x123   :  { %204 = vmatmul.bf16.vlgmr.msra.gmra.mxu0 %v127_v53 }
 0x1a0   :  { %v205_v55 = vpop.f32.mrf.mxu0 }
 0x1a1   :  { %v206_v56 = vadd.f32 %v285_v54, %v205_v55 }
 0x1a3   :  { %v210_v57 = vadd.f32 %v206_v56, %v445_v0 }
 0x1a5   :  { %212 = vst [vmem:[#allocation8] sm:$0xff] %v210_v57 }
 0x1a8   :  { %v207_v58 = vpop.f32.mrf.mxu0 }
 0x1a9   :  { %v208_v59 = vadd.f32 %v285_v54, %v207_v58 }
 0x1ab   :  { %v211_v60 = vadd.f32 %v208_v59, %v448_v1 }
 0x1ad   :  { %213 = vst [vmem:[#allocation8 + $0x8] sm:$0xff] %v211_v60 }
 0x1ae   :  { %226 = dma.vmem_to_hbm [thread:$0]  %s219_s14, 256, %s221_s2, [#allocation4], %s396_s28, %s396_s28, %s397_s29  }
 0x1af   :  { %392 = dma.done.wait [#allocation4], 256  }
 0x1b0   :  { %393 = vsyncadd [#allocation4], 4294967040 }
 0x1b1   :  { %231 = vsyncpa [#allocation3], 1 }
 0x1b2   :  { %232 = vsyncpa [#allocation6], 1 }
 0x1b3   :  { %233 = vsyncpa [#allocation4], 1 }

</bundles_post_ra>
